<compile_context>
chip_gen: v7x
topology: tpu7x:2x2x1
jax: 0.10.0
libtpu: 0.0.40
codegen_flags: <defaults>
</compile_context>

<pallas_src>
import math

import jax
import jax.numpy as jnp
from jax.experimental import pallas as pl
from jax.experimental.pallas import tpu as pltpu

LANE = 128
VMEM_LIMIT = 48 * 1024 * 1024


def _round_up(x, m):
    return ((x + m - 1) // m) * m


def _pad_to(x, shape):
    pads = [(0, t - s) for s, t in zip(x.shape, shape)]
    return jnp.pad(x, pads)


def _pick_tile(n_pad, target):
    """Largest multiple of 128 that divides n_pad and is <= target."""
    best = LANE
    c = LANE
    while c <= min(target, n_pad):
        if n_pad % c == 0:
            best = c
        c += LANE
    return best


# ---------------------------------------------------------------------------
# Kernel 1: per-layer projection  feats @ [W_self | W_neigh]  (row-tiled)
# ---------------------------------------------------------------------------
def project_kernel(x_ref, w_ref, o_ref):
    o_ref[...] = jnp.dot(x_ref[...], w_ref[...],
                         preferred_element_type=jnp.float32)


def project(feats_bf16, w_both, *, tm):
    n_pad, d_pad = feats_bf16.shape
    two_h = w_both.shape[1]
    return pl.pallas_call(
        project_kernel,
        out_shape=jax.ShapeDtypeStruct((n_pad, two_h), jnp.float32),
        grid_spec=pltpu.PrefetchScalarGridSpec(
            num_scalar_prefetch=0,
            grid=(n_pad // tm,),
            in_specs=[
                pl.BlockSpec((tm, d_pad), lambda i: (i, 0)),
                # Weight never changes across the grid -> single-buffer it.
                pl.BlockSpec((d_pad, two_h), lambda i: (0, 0),
                             pipeline_mode=pl.Buffered(1)),
            ],
            out_specs=pl.BlockSpec((tm, two_h), lambda i: (i, 0)),
        ),
        compiler_params=pltpu.CompilerParams(
            dimension_semantics=("parallel",),
            vmem_limit_bytes=VMEM_LIMIT),
    )(feats_bf16, w_both)


# ---------------------------------------------------------------------------
# Kernel 2: neighbor aggregation (int8 counts) + deg_inv/self/bias/ReLU epilogue
# ---------------------------------------------------------------------------
def sage_layer_kernel(adj_ref, pneigh_ref, pself_ref, deginv_ref, bias_ref,
                      out_ref, acc_ref):
    k = pl.program_id(1)

    @pl.when(k == 0)
    def _():
        acc_ref[...] = jnp.zeros_like(acc_ref)

    # int8 counts -> bf16 on the VPU (exact small integers), then one MXU matmul:
    # partial neighbor-sum of the already-projected features, f32 accumulation.
    adj = adj_ref[...].astype(jnp.bfloat16)
    acc_ref[...] += jnp.dot(adj, pneigh_ref[...],
                            preferred_element_type=jnp.float32)

    @pl.when(k == pl.num_programs(1) - 1)
    def _():
        # f32 epilogue: mean (deg_inv) + self projection + bias, then ReLU.
        neigh = acc_ref[...] * deginv_ref[...]          # (tm, H) * (tm, 1)
        out = pself_ref[...] + neigh + bias_ref[...]
        out_ref[...] = jnp.maximum(out, 0.0).astype(out_ref.dtype)


def sage_layer(adj_counts, p_neigh, p_self, deg_inv, bias, *, tm, tk):
    n_pad = adj_counts.shape[0]
    h_pad = p_neigh.shape[1]
    grid = (n_pad // tm, n_pad // tk)
    return pl.pallas_call(
        sage_layer_kernel,
        out_shape=jax.ShapeDtypeStruct((n_pad, h_pad), jnp.float32),
        grid_spec=pltpu.PrefetchScalarGridSpec(
            num_scalar_prefetch=0,
            grid=grid,
            in_specs=[
                pl.BlockSpec((tm, tk), lambda i, k: (i, k)),       # int8 counts tile
                pl.BlockSpec((tk, h_pad), lambda i, k: (k, 0)),    # projected neigh rows
                pl.BlockSpec((tm, h_pad), lambda i, k: (i, 0)),    # projected self rows
                pl.BlockSpec((tm, 1), lambda i, k: (i, 0)),        # f32 1/deg
                # Bias constant across the grid -> single-buffer it.
                pl.BlockSpec((1, h_pad), lambda i, k: (0, 0),
                             pipeline_mode=pl.Buffered(1)),
            ],
            out_specs=pl.BlockSpec((tm, h_pad), lambda i, k: (i, 0)),
            scratch_shapes=[pltpu.VMEM((tm, h_pad), jnp.float32)],
        ),
        compiler_params=pltpu.CompilerParams(
            dimension_semantics=("parallel", "arbitrary"),
            vmem_limit_bytes=VMEM_LIMIT),
    )(adj_counts, p_neigh, p_self, deg_inv, bias)


# ---------------------------------------------------------------------------
# Graph preprocessing (plain JAX glue)
# ---------------------------------------------------------------------------
def build_adjacency(edge_index, num_nodes):
    """Exact integer neighbor-multiplicity counts (matching Encoder.get_neighbors
    with gcn=False: both directions appended) plus the per-row f32 1/deg.
    Isolated nodes fall back to their own feature via a single diagonal 1
    (scatter on isolated rows only; no dense eye / where)."""
    src, dst = edge_index[0], edge_index[1]
    counts = jnp.zeros((num_nodes, num_nodes), jnp.int32)
    counts = counts.at[src, dst].add(1)
    counts = counts.at[dst, src].add(1)
    deg = counts.sum(axis=1)
    isolated = deg == 0
    diag = jnp.arange(num_nodes)
    counts = counts.at[diag, diag].add(jnp.where(isolated, 1, 0))
    deg = jnp.maximum(deg, 1)
    deg_inv = 1.0 / deg.astype(jnp.float32)
    return counts.astype(jnp.int8), deg_inv


def init_graphsage_params(key, input_dim, hidden_dims):
    """PyTorch nn.Linear(2*in, out) default init; weight split, transposed,
    zero-padded to 128 lanes and stacked column-wise into [W_self | W_neigh]."""
    params = []
    dims = [input_dim] + list(hidden_dims)
    for i in range(len(hidden_dims)):
        d_in, d_out = dims[i], dims[i + 1]
        key, kw, kb = jax.random.split(key, 3)
        bound = 1.0 / math.sqrt(2 * d_in)
        w = jax.random.uniform(kw, (d_out, 2 * d_in), jnp.float32,
                               minval=-bound, maxval=bound)
        b = jax.random.uniform(kb, (d_out,), jnp.float32,
                               minval=-bound, maxval=bound)
        d_in_p = _round_up(d_in, LANE)
        d_out_p = _round_up(d_out, LANE)
        w_self = _pad_to(w[:, :d_in].T, (d_in_p, d_out_p))    # (D_pad, H_pad)
        w_neigh = _pad_to(w[:, d_in:].T, (d_in_p, d_out_p))   # (D_pad, H_pad)
        w_both = jnp.concatenate([w_self, w_neigh], axis=1)   # (D_pad, 2*H_pad)
        bias = _pad_to(b.reshape(1, d_out), (1, d_out_p))     # f32
        params.append({
            "w_both": w_both.astype(jnp.bfloat16),
            "bias": bias,
            "w_raw": w,
            "b_raw": b,
            "d_out": d_out,
            "h_pad": d_out_p,
        })
    return params


def graphsage_forward(nodes, features, edge_index, params,
                      *, tm_target=512, tk_target=1024, tproj_target=256):
    # nodes is assumed to be arange(N) (all nodes), as required for the
    # multi-layer PyTorch module to index features consistently across layers.
    del nodes
    num_nodes, input_dim = features.shape
    counts, deg_inv = build_adjacency(edge_index, num_nodes)

    # Non-overshooting padding + decoupled tiles (divisors of n_pad).
    n_pad = _round_up(num_nodes, LANE)
    tm = _pick_tile(n_pad, tm_target)
    if n_pad // tm < 2 and n_pad > LANE:   # keep >= 2 row tiles for v7x megacore
        tm = _pick_tile(n_pad, n_pad // 2)
    tk = _pick_tile(n_pad, tk_target)
    tproj = _pick_tile(n_pad, tproj_target)

    adj_p = _pad_to(counts, (n_pad, n_pad))                      # int8 counts
    deginv_p = _pad_to(deg_inv.reshape(-1, 1), (n_pad, 1))       # f32
    feats = _pad_to(features,
                    (n_pad, _round_up(input_dim, LANE))).astype(jnp.float32)

    for p in params:
        h_pad = p["h_pad"]
        # Projection-first: one small N x D x 2H matmul per layer.
        proj = project(feats.astype(jnp.bfloat16), p["w_both"], tm=tproj)
        p_self = proj[:, :h_pad]                                 # f32
        p_neigh = proj[:, h_pad:].astype(jnp.bfloat16)           # MXU operand
        feats = sage_layer(adj_p, p_neigh, p_self, deginv_p, p["bias"],
                           tm=tm, tk=tk)                         # f32 output
    return feats[:num_nodes, :params[-1]["d_out"]]


def graphsage_reference(features, edge_index, params):
    """Pure-JAX f32 reference with identical module semantics."""
    num_nodes = features.shape[0]
    counts, deg_inv = build_adjacency(edge_index, num_nodes)
    adj_norm = counts.astype(jnp.float32) * deg_inv[:, None]
    feats = features
    for p in params:
        w, b = p["w_raw"], p["b_raw"]
        d_in = feats.shape[1]
        w_self = w[:, :d_in].T
        w_neigh = w[:, d_in:].T
        neigh = adj_norm @ feats
        feats = jnp.maximum(feats @ w_self + neigh @ w_neigh + b[None, :], 0.0)
    return feats


if __name__ == "__main__":
    N = 16               # number of nodes (ENZYMES-like toy graph)
    INPUT_DIM = 8
    HIDDEN_DIMS = (32, 16)

    key = jax.random.PRNGKey(0)
    key, kf = jax.random.split(key)
    features = jax.random.normal(kf, (N, INPUT_DIM), jnp.float32)

    # Ring over the first 15 nodes; node 15 is isolated (tests the fallback).
    src = jnp.arange(15, dtype=jnp.int32)
    dst = (src + 1) % 15
    edge_index = jnp.stack([src, dst], axis=0)   # (2, num_edges)

    nodes = jnp.arange(N, dtype=jnp.int32)
    params = init_graphsage_params(key, INPUT_DIM, HIDDEN_DIMS)

    out = graphsage_forward(nodes, features, edge_index, params)
    out = jax.block_until_ready(out)

    ref = graphsage_reference(features, edge_index, params)
    assert out.shape == (N, HIDDEN_DIMS[-1])
    # bf16 MXU operands (projections) => tolerance vs. the f32 reference.
    max_err = float(jnp.max(jnp.abs(out - ref)))
    assert jnp.allclose(out, ref, atol=2e-2, rtol=2e-2), max_err

    print("KERNEL_OK")
</pallas_src>

<mosaic_0001>
module attributes {stable_mosaic.version = 11 : i64} {
  func.func @project_kernel(%arg0: i32, %arg1: memref<128x128xbf16, #tpu.memory_space<vmem>>, %arg2: memref<128x256xbf16, #tpu.memory_space<vmem>>, %arg3: memref<128x256xf32, #tpu.memory_space<vmem>>) attributes {dimension_semantics = [#tpu.dimension_semantics<parallel>], iteration_bounds = array<i64: 1>, scalar_prefetch = 0 : i64, scratch_operands = 0 : i64, tpu.core_type = #tpu.core_type<tc>, window_params = [{transform_indices = @transform_0, window_bounds = array<i64: 128, 128>}, {pipeline_mode = #tpu.pipeline_mode<synchronous>, transform_indices = @transform_1, window_bounds = array<i64: 128, 256>}, {transform_indices = @transform_2, window_bounds = array<i64: 128, 256>}]} {
    %c0 = arith.constant 0 : index
    %c0_0 = arith.constant 0 : index
    %0 = vector.load %arg1[%c0, %c0_0] : memref<128x128xbf16, #tpu.memory_space<vmem>>, vector<128x128xbf16>
    %c0_1 = arith.constant 0 : index
    %c0_2 = arith.constant 0 : index
    %1 = vector.load %arg2[%c0_1, %c0_2] : memref<128x256xbf16, #tpu.memory_space<vmem>>, vector<128x256xbf16>
    %cst = arith.constant dense<0.000000e+00> : vector<128x256xf32>
    %2 = tpu.matmul %0, %1, %cst {dimension_numbers = #tpu.dot_dimension_numbers<[1], [0], [0], [1], [0, 0, 1, 1], [], []>} : vector<128x128xbf16>, vector<128x256xbf16>, vector<128x256xf32> -> vector<128x256xf32>
    %c0_3 = arith.constant 0 : index
    %c0_4 = arith.constant 0 : index
    %3 = vector.load %arg3[%c0_3, %c0_4] : memref<128x256xf32, #tpu.memory_space<vmem>>, vector<128x256xf32>
    tpu.vector_store %arg3[%c0_3, %c0_4], %2 {strides = array<i32>} : memref<128x256xf32, #tpu.memory_space<vmem>>, vector<128x256xf32>,
    return
  }
  func.func @transform_0(%arg0: i32) -> (i32, i32) {
    %c0_i32 = arith.constant 0 : i32
    %c0_i32_0 = arith.constant 0 : i32
    return %arg0, %c0_i32 : i32, i32
  }
  func.func @transform_1(%arg0: i32) -> (i32, i32) {
    %c0_i32 = arith.constant 0 : i32
    %c0_i32_0 = arith.constant 0 : i32
    %c0_i32_1 = arith.constant 0 : i32
    return %c0_i32, %c0_i32_0 : i32, i32
  }
  func.func @transform_2(%arg0: i32) -> (i32, i32) {
    %c0_i32 = arith.constant 0 : i32
    %c0_i32_0 = arith.constant 0 : i32
    return %arg0, %c0_i32 : i32, i32
  }
}

</mosaic_0001>

<bundles_post_ra>
// kernel: tpu_custom_call.1
= control target key start
LH: loop header
LB: loop body
LE: loop exit
PB: predicated region body
PF: predicated region fallthrough
CT: control target
= control target key end

     0   :  { %7 = vsyncpa [#allocation3], 0  ;;  %s587_s0 = inlined_call_operand.hbm [shape: bf16[128,128], index: 0, kind: input, shape index: {}]   ;;  %s588_s1 = inlined_call_operand.hbm [shape: bf16[128,256], index: 1, kind: input, shape index: {}]   ;;  %s589_s2 = inlined_call_operand.hbm [shape: f32[128,256], index: 2, kind: output, shape index: {}]  }
   0x1   :  { %8 = vsyncpa [#allocation6], 0 }
   0x2   :  { %9 = vsyncpa [#allocation4], 0  ;;  %s518_s9 = smov [#allocation2]   ;;  %s446_s13 = scalar_lea.hbm %s587_s0, 1024 }
   0x3   :  { %s15_s10 = sshll.u32 %s518_s9, 4  ;;  %p447_p0 = scmp.ne.s32.totalorder %s587_s0, %s446_s13  ;;  %s16_s10 = int_to_ptr.vmem [resolvable:$true] %s15_s10 }
   0x4   :  { %p450_p1 = scmp.lt.u32.totalorder %s446_s13, %s587_s0 }
   0x6   :  { %p452_p2 = pnand %p450_p1, %p447_p0 }
   0x8   :  { %455 = shalt.err (!%p452_p2)
}
   0x9   :  { %s456_s18 = scalar_lea.vmem %s16_s10, 1024  ;;  %p461_p4 = scmp.lt.s32.totalorder %s16_s10, %s16_s10 }
   0xa   :  { %p457_p3 = scmp.ne.s32.totalorder %s16_s10, %s456_s18  ;;  %p462_p5 = scmp.lt.s32.totalorder %s456_s18, %s456_s18 }
   0xc   :  { %p463_p6 = por %p462_p5, %p461_p4 }
   0xe   :  { %p464_p7 = pnand %p463_p6, %p457_p3 }
  0x10   :  { %467 = shalt.err (!%p464_p7)
}
  0x11   :  { %s519_s19 = smov 64   ;;  %s520_s20 = smov 4  }
  0x12   :  { %21 = dma.hbm_to_vmem [thread:$0]  %s587_s0, 1024, %s16_s10, [#allocation3], %s519_s19, %s519_s19, %s520_s20  }
  0x13   :  { %s521_s23 = smov [#allocation5]   ;;  %s468_s27 = scalar_lea.hbm %s588_s1, 2048 }
  0x14   :  { %s27_s24 = sshll.u32 %s521_s23, 4  ;;  %p469_p8 = scmp.ne.s32.totalorder %s588_s1, %s468_s27  ;;  %s28_s24 = int_to_ptr.vmem [resolvable:$true] %s27_s24 }
  0x15   :  { %p472_p9 = scmp.lt.u32.totalorder %s468_s27, %s588_s1 }
  0x17   :  { %p474_p10 = pnand %p472_p9, %p469_p8 }
  0x19   :  { %477 = shalt.err (!%p474_p10)
}
  0x1a   :  { %s478_s4 = scalar_lea.vmem %s28_s24, 2048  ;;  %p483_p12 = scmp.lt.s32.totalorder %s28_s24, %s28_s24 }
  0x1b   :  { %p479_p11 = scmp.ne.s32.totalorder %s28_s24, %s478_s4  ;;  %p484_p13 = scmp.lt.s32.totalorder %s478_s4, %s478_s4 }
  0x1d   :  { %p485_p0 = por %p484_p13, %p483_p12 }
  0x1f   :  { %p486_p1 = pnand %p485_p0, %p479_p11 }
  0x21   :  { %489 = shalt.err (!%p486_p1)
}
  0x22   :  { %s522_s0 = smov 128   ;;  %s523_s5 = smov 8  }
  0x23   :  { %33 = dma.hbm_to_vmem [thread:$0]  %s588_s1, 2048, %s28_s24, [#allocation6], %s522_s0, %s522_s0, %s523_s5  }
  0x24   :  { %512 = dma.done.wait [#allocation3], 1024  }
  0x25   :  { %513 = vsyncadd [#allocation3], 4294966272 }
  0x26   :  { %514 = dma.done.wait [#allocation6], 2048  }
  0x27   :  { %515 = vsyncadd [#allocation6], 4294965248  ;;  %v524_v0 = vmov 0   ;;  %v414_v1 = vld [vmem:[#allocation5 + $0x4] ss:$8 sps:$4 sm:$0xff]   ;;  %v442_v21 = vld [vmem:[#allocation2 + $0x10] sm:$0xff]  }
  0x28   :  { %233 = vmatprep.mubr.bf16.mxu0 %v524_v0  ;;  %273 = vmatprep.mubr.bf16.mxu1 %v524_v0  ;;  %v416_v2 = vld [vmem:[#allocation5] ss:$8 sps:$4 sm:$0xff]   ;;  %v417_v3 = vld [vmem:[#allocation5 + $0x14] ss:$8 sps:$4 sm:$0xff]   ;;  %v419_v4 = vld [vmem:[#allocation5 + $0x10] ss:$8 sps:$4 sm:$0xff]  }
  0x29   :  { %201 = vmatprep.subr.bf16.mxu0 %v414_v1  ;;  %388 = vmatprep.subr.bf16.mxu1 %v414_v1  ;;  %v420_v5 = vld [vmem:[#allocation5 + $0x24] ss:$8 sps:$4 sm:$0xff]   ;;  %v422_v6 = vld [vmem:[#allocation5 + $0x20] ss:$8 sps:$4 sm:$0xff]   ;;  %v423_v7 = vld [vmem:[#allocation5 + $0x34] ss:$8 sps:$4 sm:$0xff]  }
  0x2a   :  { %202 = vmatpush1.bf16.msra.mxu0 %v416_v2  ;;  %396 = vmatpush1.bf16.msra.mxu1 %v416_v2  ;;  %v425_v8 = vld [vmem:[#allocation5 + $0x30] ss:$8 sps:$4 sm:$0xff]   ;;  %v426_v9 = vld [vmem:[#allocation5 + $0x44] ss:$8 sps:$4 sm:$0xff]   ;;  %v428_v10 = vld [vmem:[#allocation5 + $0x40] ss:$8 sps:$4 sm:$0xff]  }
  0x2b   :  { %203 = vmatprep.subr.bf16.mxu0 %v417_v3  ;;  %389 = vmatprep.subr.bf16.mxu1 %v417_v3  ;;  %v429_v11 = vld [vmem:[#allocation5 + $0x54] ss:$8 sps:$4 sm:$0xff]   ;;  %v431_v12 = vld [vmem:[#allocation5 + $0x50] ss:$8 sps:$4 sm:$0xff]   ;;  %v432_v13 = vld [vmem:[#allocation5 + $0x64] ss:$8 sps:$4 sm:$0xff]  }
  0x2c   :  { %v434_v14 = vld [vmem:[#allocation5 + $0x60] ss:$8 sps:$4 sm:$0xff]   ;;  %v435_v15 = vld [vmem:[#allocation5 + $0x74] ss:$8 sps:$4 sm:$0xff]   ;;  %v437_v16 = vld [vmem:[#allocation5 + $0x70] ss:$8 sps:$4 sm:$0xff]  }
  0x2d   :  { %v438_v17 = vld [vmem:[#allocation2] sm:$0xff]   ;;  %v440_v19 = vld [vmem:[#allocation2 + $0x8] sm:$0xff]   ;;  %v443_v22 = vld [vmem:[#allocation2 + $0x30] sm:$0xff]   ;;  %s525_s1 = smov [#allocation7]  }
  0x2e   :  { %204 = vmatpush1.bf16.msra.mxu0 %v419_v4  ;;  %397 = vmatpush1.bf16.msra.mxu1 %v419_v4  ;;  %v439_v18 = vld [vmem:[#allocation2 + $0x20] sm:$0xff]   ;;  %v441_v20 = vld [vmem:[#allocation2 + $0x28] sm:$0xff]   ;;  %v444_v23 = vld [vmem:[#allocation2 + $0x18] sm:$0xff]   ;;  %s351_s8 = sshll.u32 %s525_s1, 4  ;;  %s352_s8 = int_to_ptr.vmem [resolvable:$true] %s351_s8 }
  0x2f   :  { %205 = vmatprep.subr.bf16.mxu0 %v420_v5  ;;  %390 = vmatprep.subr.bf16.mxu1 %v420_v5  ;;  %v445_v24 = vld [vmem:[#allocation2 + $0x38] sm:$0xff]   ;;  %s490_s9 = scalar_lea.vmem %s352_s8, 4096  ;;  %p495_p3 = scmp.lt.s32.totalorder %s352_s8, %s352_s8 }
  0x30   :  { %p491_p2 = scmp.ne.s32.totalorder %s352_s8, %s490_s9  ;;  %p496_p4 = scmp.lt.s32.totalorder %s490_s9, %s490_s9 }
  0x32   :  { %206 = vmatpush1.bf16.msra.mxu0 %v422_v6  ;;  %398 = vmatpush1.bf16.msra.mxu1 %v422_v6  ;;  %p497_p5 = por %p496_p4, %p495_p3 }
  0x33   :  { %207 = vmatprep.subr.bf16.mxu0 %v423_v7  ;;  %391 = vmatprep.subr.bf16.mxu1 %v423_v7 }
  0x34   :  { %p498_p6 = pnand %p497_p5, %p491_p2 }
  0x36   :  { %208 = vmatpush1.bf16.msra.mxu0 %v425_v8  ;;  %399 = vmatpush1.bf16.msra.mxu1 %v425_v8 }
  0x37   :  { %209 = vmatprep.subr.bf16.mxu0 %v426_v9  ;;  %392 = vmatprep.subr.bf16.mxu1 %v426_v9 }
  0x3a   :  { %210 = vmatpush1.bf16.msra.mxu0 %v428_v10  ;;  %400 = vmatpush1.bf16.msra.mxu1 %v428_v10 }
  0x3b   :  { %211 = vmatprep.subr.bf16.mxu0 %v429_v11  ;;  %393 = vmatprep.subr.bf16.mxu1 %v429_v11 }
  0x3e   :  { %212 = vmatpush1.bf16.msra.mxu0 %v431_v12  ;;  %401 = vmatpush1.bf16.msra.mxu1 %v431_v12 }
  0x3f   :  { %213 = vmatprep.subr.bf16.mxu0 %v432_v13  ;;  %394 = vmatprep.subr.bf16.mxu1 %v432_v13 }
  0x42   :  { %214 = vmatpush1.bf16.msra.mxu0 %v434_v14  ;;  %402 = vmatpush1.bf16.msra.mxu1 %v434_v14 }
  0x43   :  { %215 = vmatprep.subr.bf16.mxu0 %v435_v15  ;;  %395 = vmatprep.subr.bf16.mxu1 %v435_v15 }
  0x46   :  { %216 = vmatpush1.bf16.msra.mxu0 %v437_v16  ;;  %403 = vmatpush1.bf16.msra.mxu1 %v437_v16 }
  0x49   :  { %234 = vmatmul.mubr.bf16.vlgmr.msra.gmra.mrb[0].mxu0 %v438_v17  ;;  %274 = vmatmul.mubr.bf16.vlgmr.msra.gmra.mrb[0].mxu1 %v439_v18 }
  0x4a   :  { %243 = vmatprep.mubr.bf16.mxu0 %v524_v0  ;;  %283 = vmatprep.mubr.bf16.mxu1 %v524_v0 }
  0x51   :  { %244 = vmatmul.mubr.bf16.gmra.mrb[4].mxu0 %v440_v19  ;;  %284 = vmatmul.mubr.bf16.gmra.mrb[4].mxu1 %v441_v20 }
  0x52   :  { %253 = vmatprep.mubr.bf16.mxu0 %v524_v0  ;;  %293 = vmatprep.mubr.bf16.mxu1 %v524_v0 }
  0x59   :  { %254 = vmatmul.mubr.bf16.gmra.mrb[8].mxu0 %v442_v21  ;;  %294 = vmatmul.mubr.bf16.gmra.mrb[8].mxu1 %v443_v22 }
  0x5a   :  { %263 = vmatprep.mubr.bf16.mxu0 %v524_v0  ;;  %303 = vmatprep.mubr.bf16.mxu1 %v524_v0 }
  0x61   :  { %264 = vmatmul.mubr.bf16.gmra.mrb[12].mxu0 %v444_v23  ;;  %304 = vmatmul.mubr.bf16.gmra.mrb[12].mxu1 %v445_v24 }
 0x11c   :  { %v235_v25 = vpop.f32.mrb[0].mxu0  ;;  %v275_v26 = vpop.f32.mrb[0].mxu1 }
 0x11d   :  { %314 = vst [vmem:[#allocation7] sm:$0xff] %v235_v25  ;;  %330 = vst [vmem:[#allocation7 + $0x80] sm:$0xff] %v275_v26  ;;  %v237_v27 = vpop.f32.mrb[1].mxu0  ;;  %v277_v28 = vpop.f32.mrb[1].mxu1 }
 0x11e   :  { %315 = vst [vmem:[#allocation7 + $0x8] sm:$0xff] %v237_v27  ;;  %331 = vst [vmem:[#allocation7 + $0x88] sm:$0xff] %v277_v28  ;;  %v239_v29 = vpop.f32.mrb[2].mxu0  ;;  %v279_v30 = vpop.f32.mrb[2].mxu1 }
 0x11f   :  { %316 = vst [vmem:[#allocation7 + $0x10] sm:$0xff] %v239_v29  ;;  %332 = vst [vmem:[#allocation7 + $0x90] sm:$0xff] %v279_v30  ;;  %v241_v31 = vpop.f32.mrb[3].mxu0  ;;  %v281_v32 = vpop.f32.mrb[3].mxu1 }
 0x120   :  { %317 = vst [vmem:[#allocation7 + $0x18] sm:$0xff] %v241_v31  ;;  %333 = vst [vmem:[#allocation7 + $0x98] sm:$0xff] %v281_v32 }
 0x124   :  { %v245_v33 = vpop.f32.mrb[4].mxu0  ;;  %v285_v34 = vpop.f32.mrb[4].mxu1 }
 0x125   :  { %318 = vst [vmem:[#allocation7 + $0x20] sm:$0xff] %v245_v33  ;;  %334 = vst [vmem:[#allocation7 + $0xa0] sm:$0xff] %v285_v34  ;;  %v247_v35 = vpop.f32.mrb[5].mxu0  ;;  %v287_v36 = vpop.f32.mrb[5].mxu1 }
 0x126   :  { %319 = vst [vmem:[#allocation7 + $0x28] sm:$0xff] %v247_v35  ;;  %335 = vst [vmem:[#allocation7 + $0xa8] sm:$0xff] %v287_v36  ;;  %v249_v37 = vpop.f32.mrb[6].mxu0  ;;  %v289_v38 = vpop.f32.mrb[6].mxu1 }
 0x127   :  { %320 = vst [vmem:[#allocation7 + $0x30] sm:$0xff] %v249_v37  ;;  %336 = vst [vmem:[#allocation7 + $0xb0] sm:$0xff] %v289_v38  ;;  %v251_v39 = vpop.f32.mrb[7].mxu0  ;;  %v291_v40 = vpop.f32.mrb[7].mxu1 }
 0x128   :  { %321 = vst [vmem:[#allocation7 + $0x38] sm:$0xff] %v251_v39  ;;  %337 = vst [vmem:[#allocation7 + $0xb8] sm:$0xff] %v291_v40 }
 0x12c   :  { %v255_v41 = vpop.f32.mrb[8].mxu0  ;;  %v295_v42 = vpop.f32.mrb[8].mxu1 }
 0x12d   :  { %322 = vst [vmem:[#allocation7 + $0x40] sm:$0xff] %v255_v41  ;;  %338 = vst [vmem:[#allocation7 + $0xc0] sm:$0xff] %v295_v42  ;;  %v257_v43 = vpop.f32.mrb[9].mxu0  ;;  %v297_v44 = vpop.f32.mrb[9].mxu1 }
 0x12e   :  { %323 = vst [vmem:[#allocation7 + $0x48] sm:$0xff] %v257_v43  ;;  %339 = vst [vmem:[#allocation7 + $0xc8] sm:$0xff] %v297_v44  ;;  %v259_v45 = vpop.f32.mrb[10].mxu0  ;;  %v299_v46 = vpop.f32.mrb[10].mxu1 }
 0x12f   :  { %324 = vst [vmem:[#allocation7 + $0x50] sm:$0xff] %v259_v45  ;;  %340 = vst [vmem:[#allocation7 + $0xd0] sm:$0xff] %v299_v46  ;;  %v261_v47 = vpop.f32.mrb[11].mxu0  ;;  %v301_v48 = vpop.f32.mrb[11].mxu1 }
 0x130   :  { %325 = vst [vmem:[#allocation7 + $0x58] sm:$0xff] %v261_v47  ;;  %341 = vst [vmem:[#allocation7 + $0xd8] sm:$0xff] %v301_v48 }
 0x134   :  { %v265_v49 = vpop.f32.mrb[12].mxu0  ;;  %v305_v50 = vpop.f32.mrb[12].mxu1 }
 0x135   :  { %326 = vst [vmem:[#allocation7 + $0x60] sm:$0xff] %v265_v49  ;;  %342 = vst [vmem:[#allocation7 + $0xe0] sm:$0xff] %v305_v50  ;;  %v267_v51 = vpop.f32.mrb[13].mxu0  ;;  %v307_v52 = vpop.f32.mrb[13].mxu1 }
 0x136   :  { %327 = vst [vmem:[#allocation7 + $0x68] sm:$0xff] %v267_v51  ;;  %343 = vst [vmem:[#allocation7 + $0xe8] sm:$0xff] %v307_v52  ;;  %v269_v53 = vpop.f32.mrb[14].mxu0  ;;  %v309_v54 = vpop.f32.mrb[14].mxu1 }
 0x137   :  { %328 = vst [vmem:[#allocation7 + $0x70] sm:$0xff] %v269_v53  ;;  %344 = vst [vmem:[#allocation7 + $0xf0] sm:$0xff] %v309_v54  ;;  %v271_v55 = vpop.f32.mrb[15].mxu0  ;;  %v311_v56 = vpop.f32.mrb[15].mxu1 }
 0x138   :  { %329 = vst [vmem:[#allocation7 + $0x78] sm:$0xff] %v271_v55  ;;  %345 = vst [vmem:[#allocation7 + $0xf8] sm:$0xff] %v311_v56 }
 0x139   :  { %501 = shalt.err (!%p498_p6)
}
 0x13a   :  { %s502_s12 = scalar_lea.hbm %s589_s2, 4096 }
 0x13b   :  { %p503_p7 = scmp.ne.s32.totalorder %s589_s2, %s502_s12  ;;  %p506_p8 = scmp.lt.u32.totalorder %s502_s12, %s589_s2 }
 0x13d   :  { %p508_p9 = pnand %p506_p8, %p503_p7 }
 0x13f   :  { %511 = shalt.err (!%p508_p9)
}
 0x140   :  { %s526_s17 = smov 256   ;;  %s527_s18 = smov 16  }
 0x141   :  { %357 = dma.vmem_to_hbm [thread:$0]  %s352_s8, 4096, %s589_s2, [#allocation4], %s526_s17, %s526_s17, %s527_s18  }
 0x142   :  { %516 = dma.done.wait [#allocation4], 4096  }
 0x143   :  { %517 = vsyncadd [#allocation4], 4294963200 }
 0x144   :  { %361 = vsyncpa [#allocation3], 1 }
 0x145   :  { %362 = vsyncpa [#allocation6], 1 }
 0x146   :  { %363 = vsyncpa [#allocation4], 1 }

</bundles_post_ra>
